<compile_context>
chip_gen: v7x
topology: tpu7x:2x2x1
jax: 0.10.0
libtpu: 0.0.40
codegen_flags: <defaults>
</compile_context>

<pallas_src>
import functools

import jax
import jax.numpy as jnp
from jax.experimental import pallas as pl
from jax.experimental.pallas import tpu as pltpu


def _nlin_kernel(x_ref, wt_ref, o_re_ref, o_im_ref, *, c, mxu_dtype):
    # x_ref : (tm, 2c) f32, interleaved [re0, im0, re1, im1, ...]
    # wt_ref: (2c, 2c) mxu_dtype, columns de-interleaved -> [re_0..re_{c-1} | im_0..im_{c-1}]
    # o_*   : (tm, c) f32 (re / im halves of the distorted output)
    x = x_ref[...].astype(mxu_dtype)                       # cast in-kernel (halves MXU op width cost, keeps HBM read f32)
    mixed = jnp.dot(x, wt_ref[...],
                    preferred_element_type=jnp.float32)    # (tm, 2c) f32 accum on MXU
    re = mixed[:, :c]                                      # static lane slices (free at aligned c)
    im = mixed[:, c:]
    amp = re * re + im * im                                # f32 on the VPU — no MXU pair-sum
    o_re_ref[...] = (amp * re).astype(o_re_ref.dtype)
    o_im_ref[...] = (amp * im).astype(o_im_ref.dtype)


def _pick_tm(n_rows, d, mxu_itemsize, max_tm=512, vmem_budget_bytes=24 << 20):
    """Row-tile size: full problem if small, else the largest multiple of 8
    (capped at max_tm) whose double-buffered x/out blocks plus the resident
    weight fit the VMEM budget (safe for v7x's 64 MiB / 32 MiB scoped)."""
    w_bytes = 2 * d * d * mxu_itemsize        # weight blocks (double-buffered)
    per_row = 2 * (d * 4 + d * 4)             # x block + out blocks, f32, double-buffered
    tm = (vmem_budget_bytes - w_bytes) // max(per_row, 1)
    tm = int(max(8, min(max_tm, tm)))
    tm -= tm % 8
    tm = max(tm, 8)
    if n_rows <= tm:
        tm = n_rows                           # full dim -> always (8,128)-legal
    return tm, w_bytes, per_row


def external_nlin_core(x, w, *, matmul_dtype=jnp.bfloat16):
    """x: (b, s, c, 2) float32; w: (2c, 2c) float32 (nn.Linear weight, y = x @ W.T)."""
    b, s, c, two = x.shape
    assert two == 2
    D = 2 * c
    N = b * s

    x2d = x.reshape(N, D)

    # De-interleave the *output* features of the linear layer by permuting the
    # columns of W.T: columns [0..c) are the real parts, [c..2c) the imaginary
    # parts.  (In a real model, do this permute + cast once at load time.)
    wt = jnp.transpose(w)                                   # (2c_in, 2c_out)
    wt_perm = jnp.concatenate([wt[:, 0::2], wt[:, 1::2]], axis=1).astype(matmul_dtype)

    mxu_itemsize = jnp.dtype(matmul_dtype).itemsize
    tm, w_bytes, per_row = _pick_tm(N, D, mxu_itemsize)
    grid = (pl.cdiv(N, tm),)

    # Explicit VMEM limit (v7x-aware); our footprint stays well under it.
    vmem_limit = int(max(w_bytes + tm * per_row + (4 << 20), 32 << 20))

    kernel = functools.partial(_nlin_kernel, c=c, mxu_dtype=matmul_dtype)

    out_re, out_im = pl.pallas_call(
        kernel,
        out_shape=(jax.ShapeDtypeStruct((N, c), x.dtype),
                   jax.ShapeDtypeStruct((N, c), x.dtype)),
        grid_spec=pltpu.PrefetchScalarGridSpec(
            num_scalar_prefetch=0,
            grid=grid,
            in_specs=[
                pl.BlockSpec((tm, D), lambda i: (i, 0)),
                # Grid-invariant weight (constant block index -> no re-DMA per
                # step).  A further VMEM saving would be pipeline_mode=
                # pl.Buffered(1) to drop its second buffer.
                pl.BlockSpec((D, D), lambda i: (0, 0)),
            ],
            out_specs=[
                pl.BlockSpec((tm, c), lambda i: (i, 0)),
                pl.BlockSpec((tm, c), lambda i: (i, 0)),
            ],
        ),
        compiler_params=pltpu.CompilerParams(
            dimension_semantics=("parallel",),   # megacore sharding on v7x
            vmem_limit_bytes=vmem_limit,
        ),
        cost_estimate=pl.CostEstimate(
            flops=2 * N * D * D + 7 * N * D,
            transcendentals=0,
            bytes_accessed=4 * N * D + mxu_itemsize * D * D + 4 * N * D,
        ),
    )(x2d, wt_perm)

    # Re-interleave [re | im] -> (..., c, 2); in a real model this fuses into
    # the consumer.
    return jnp.stack([out_re, out_im], axis=-1).reshape(b, s, c, 2)


def _reference(x, w, matmul_dtype=jnp.float32):
    """Pure-JAX reference matching the PyTorch module (optionally with the same
    MXU-input quantization as the kernel)."""
    b, s, c, _ = x.shape
    x2d = x.reshape(b * s, 2 * c).astype(matmul_dtype)
    mixed = jnp.dot(x2d, w.T.astype(matmul_dtype),
                    preferred_element_type=jnp.float32)
    mixed = mixed.reshape(b, s, c, 2)
    amp = mixed[..., 0] ** 2 + mixed[..., 1] ** 2
    return amp[..., None] * mixed


if __name__ == "__main__":
    key = jax.random.PRNGKey(0)
    kx, kw = jax.random.split(key)

    b, s, c = 2, 8, 4  # small shapes consistent with the module
    x = jax.random.normal(kx, (b, s, c, 2), dtype=jnp.float32)

    # Deterministic weight matching nn.Linear's default U(-1/sqrt(in), 1/sqrt(in))
    fan_in = 2 * c
    bound = 1.0 / (float(fan_in) ** 0.5)
    w = jax.random.uniform(kw, (2 * c, 2 * c), dtype=jnp.float32,
                           minval=-bound, maxval=bound)

    # Exact-f32 path vs. the PyTorch-equivalent reference.
    out_f32 = jax.block_until_ready(external_nlin_core(x, w, matmul_dtype=jnp.float32))
    ref_f32 = _reference(x, w, jnp.float32)
    assert out_f32.shape == (b, s, c, 2)
    assert jnp.allclose(out_f32, ref_f32, atol=1e-4, rtol=1e-4), \
        "f32 kernel mismatch vs reference"

    # Default bf16-MXU path (v6e/v7x recommendation) vs. a matching-precision
    # reference (same quantization, f32 accumulation and f32 nonlinearity).
    out_bf16 = jax.block_until_ready(external_nlin_core(x, w))
    ref_bf16 = _reference(x, w, jnp.bfloat16)
    assert out_bf16.shape == (b, s, c, 2)
    assert jnp.allclose(out_bf16, ref_bf16, atol=1e-4, rtol=1e-4), \
        "bf16 kernel mismatch vs matching-precision reference"

    print("KERNEL_OK")
</pallas_src>

<mosaic_0001>
module attributes {stable_mosaic.version = 11 : i64} {
  func.func @_nlin_kernel(%arg0: i32, %arg1: memref<16x8xf32, #tpu.memory_space<vmem>>, %arg2: memref<8x8xf32, #tpu.memory_space<vmem>>, %arg3: memref<16x4xf32, #tpu.memory_space<vmem>>, %arg4: memref<16x4xf32, #tpu.memory_space<vmem>>) attributes {dimension_semantics = [#tpu.dimension_semantics<parallel>], iteration_bounds = array<i64: 1>, scalar_prefetch = 0 : i64, scratch_operands = 0 : i64, tpu.core_type = #tpu.core_type<tc>, window_params = [{transform_indices = @transform_0, window_bounds = array<i64: 16, 8>}, {pipeline_mode = #tpu.pipeline_mode<synchronous>, transform_indices = @transform_1, window_bounds = array<i64: 8, 8>}, {transform_indices = @transform_2, window_bounds = array<i64: 16, 4>}, {transform_indices = @transform_3, window_bounds = array<i64: 16, 4>}]} {
    %c0 = arith.constant 0 : index
    %c0_0 = arith.constant 0 : index
    %0 = vector.load %arg1[%c0, %c0_0] : memref<16x8xf32, #tpu.memory_space<vmem>>, vector<16x8xf32>
    %c0_1 = arith.constant 0 : index
    %c0_2 = arith.constant 0 : index
    %1 = vector.load %arg2[%c0_1, %c0_2] : memref<8x8xf32, #tpu.memory_space<vmem>>, vector<8x8xf32>
    %cst = arith.constant dense<0.000000e+00> : vector<16x8xf32>
    %2 = tpu.matmul %0, %1, %cst {dimension_numbers = #tpu.dot_dimension_numbers<[1], [0], [0], [1], [0, 0, 1, 1], [], []>} : vector<16x8xf32>, vector<8x8xf32>, vector<16x8xf32> -> vector<16x8xf32>
    %3 = vector.extract_strided_slice %2 {offsets = [0, 0], sizes = [16, 4], strides = [1, 1]} : vector<16x8xf32> to vector<16x4xf32>
    %4 = vector.extract_strided_slice %2 {offsets = [0, 4], sizes = [16, 4], strides = [1, 1]} : vector<16x8xf32> to vector<16x4xf32>
    %5 = arith.mulf %3, %3 : vector<16x4xf32>
    %6 = arith.mulf %4, %4 : vector<16x4xf32>
    %7 = arith.addf %5, %6 : vector<16x4xf32>
    %8 = arith.mulf %7, %3 : vector<16x4xf32>
    %c0_3 = arith.constant 0 : index
    %c0_4 = arith.constant 0 : index
    %9 = vector.load %arg3[%c0_3, %c0_4] : memref<16x4xf32, #tpu.memory_space<vmem>>, vector<16x4xf32>
    tpu.vector_store %arg3[%c0_3, %c0_4], %8 {strides = array<i32>} : memref<16x4xf32, #tpu.memory_space<vmem>>, vector<16x4xf32>,
    %10 = arith.mulf %7, %4 : vector<16x4xf32>
    %c0_5 = arith.constant 0 : index
    %c0_6 = arith.constant 0 : index
    %11 = vector.load %arg4[%c0_5, %c0_6] : memref<16x4xf32, #tpu.memory_space<vmem>>, vector<16x4xf32>
    tpu.vector_store %arg4[%c0_5, %c0_6], %10 {strides = array<i32>} : memref<16x4xf32, #tpu.memory_space<vmem>>, vector<16x4xf32>,
    return
  }
  func.func @transform_0(%arg0: i32) -> (i32, i32) {
    %c0_i32 = arith.constant 0 : i32
    %c0_i32_0 = arith.constant 0 : i32
    return %arg0, %c0_i32 : i32, i32
  }
  func.func @transform_1(%arg0: i32) -> (i32, i32) {
    %c0_i32 = arith.constant 0 : i32
    %c0_i32_0 = arith.constant 0 : i32
    %c0_i32_1 = arith.constant 0 : i32
    return %c0_i32, %c0_i32_0 : i32, i32
  }
  func.func @transform_2(%arg0: i32) -> (i32, i32) {
    %c0_i32 = arith.constant 0 : i32
    %c0_i32_0 = arith.constant 0 : i32
    return %arg0, %c0_i32 : i32, i32
  }
  func.func @transform_3(%arg0: i32) -> (i32, i32) {
    %c0_i32 = arith.constant 0 : i32
    %c0_i32_0 = arith.constant 0 : i32
    return %arg0, %c0_i32 : i32, i32
  }
}

</mosaic_0001>

<bundles_post_ra>
// kernel: tpu_custom_call.1
= control target key start
LH: loop header
LB: loop body
LE: loop exit
PB: predicated region body
PF: predicated region fallthrough
CT: control target
= control target key end

     0   :  { %vm16_vm0 = vcmask 64512   ;;  %s146_s18 = smov 124   ;;  %vm112_vm1 = vcmask 31744   ;;  %s188_s1 = inlined_call_operand.vmem [shape: f32[8,8], index: 1, kind: input, shape index: {}]   ;;  %s189_s0 = inlined_call_operand.vmem [shape: f32[16,8], index: 0, kind: input, shape index: {}]   ;;  %s190_s2 = inlined_call_operand.vmem [shape: f32[16,4], index: 2, kind: output, shape index: {0}]   ;;  %s191_s3 = inlined_call_operand.vmem [shape: f32[16,4], index: 3, kind: output, shape index: {1}]  }
   0x1   :  { %v15_v0 = vld [vmem:[%s188_s1] sm:$0xff]  ;;  %v14_v2 = vld [vmem:[%s189_s0 + $0x8] sm:$0xff] }
   0x2   :  { %v13_v1 = vld [vmem:[%s189_s0] sm:$0xff]  ;;  %140 = vmatprep.subr.mxu0 %v15_v0 }
   0x3   :  { %142 = vmatprep.mubr.msk.f32.mxu0 %vm16_vm0, %v13_v1  ;;  %141 = vmatpush3.msra.mxu0 %v15_v0 }
   0x4   :  { %143 = vmatmul.mubr.msk.f32.vlgmr.msra.gmra.mrb[0].mxu0 %vm16_vm0, %v14_v2 }
  0xd7   :  { %v144_v3 = vpop.f32.mrb[0].mxu0 }
  0xd8   :  { %v89_v4 = vpop.f32.mrb[1].mxu0  ;;  %v99_v6 = vmul.f32 %v144_v3, %v144_v3 }
  0xd9   :  { %117 = vrot.lane.b32.xlu1 %v89_v4, %s146_s18  ;;  %v98_v5 = vmul.f32 %v89_v4, %v89_v4 }
  0xdb   :  { %102 = vrot.lane.b32.xlu0 %v98_v5, %s146_s18 }
  0xdd   :  { %119 = vrot.lane.b32.xlu1 %v144_v3, %s146_s18 }
  0xdf   :  { %104 = vrot.lane.b32.xlu0 %v99_v6, %s146_s18 }
 0x14b   :  { %v118_v7 = vpop.permute.xlu1 %117 }
 0x14d   :  { %v103_v8 = vpop.permute.xlu0 %102 }
 0x14e   :  { %v108_v9 = vadd.f32 %v103_v8, %v98_v5 }
 0x14f   :  { %v120_v14 = vpop.permute.xlu1 %119 }
 0x150   :  { %v110_v10 = vmul.f32 %v108_v9, %v89_v4  ;;  %v123_v11 = vmul.f32 %v118_v7, %v108_v9 }
 0x151   :  { %v105_v12 = vpop.permute.xlu0 %104 }
 0x152   :  { %113 = vst.msk [vmem:[%s190_s2] sm:$0xff] %vm112_vm1, %v110_v10  ;;  %125 = vst.msk [vmem:[%s191_s3] sm:$0xff] %vm112_vm1, %v123_v11  ;;  %v109_v13 = vadd.f32 %v105_v12, %v99_v6 }
 0x154   :  { %v111_v15 = vmul.f32 %v144_v3, %v109_v13  ;;  %v124_v16 = vmul.f32 %v120_v14, %v109_v13 }
 0x156   :  { %114 = vst.msk [vmem:[%s190_s2 + $0x8] sm:$0xff] %vm112_vm1, %v111_v15  ;;  %126 = vst.msk [vmem:[%s191_s3 + $0x8] sm:$0xff] %vm112_vm1, %v124_v16 }

</bundles_post_ra>
